<compile_context>
chip_gen: v6e
topology: v6e:2x2x1
jax: 0.10.0
libtpu: 0.0.40
codegen_flags: <defaults>
</compile_context>

<pallas_src>
import functools
import math

import jax
import jax.numpy as jnp
from jax.experimental import pallas as pl
from jax.experimental.pallas import tpu as pltpu


def _round_up(n, m):
    return ((n + m - 1) // m) * m


def _vmem_budget_bytes():
    """Per-generation scoped-VMEM budget (v7x has 64 MiB physical VMEM)."""
    try:
        cap = int(pltpu.get_tpu_info().vmem_capacity_bytes)
    except Exception:
        cap = 64 * 1024 * 1024          # conservative fallback
    if cap >= 100 * 1024 * 1024:        # v5e / v6e: 128 MiB physical
        return 64 * 1024 * 1024
    return 32 * 1024 * 1024             # v7x: 64 MiB physical


def _choose_tb(B, D, dtype_bytes, vmem_budget):
    """Batch tile: fill the VMEM budget, keep >=2 tiles for v7x dual-TC."""
    # Double-buffered bytes per batch row: x tile + pred row + label row.
    per_row = 2 * (D * dtype_bytes + 2 * 4)
    tb_cap = (vmem_budget // 2) // per_row          # ~2x headroom
    tb_cap = max(512, (tb_cap // 512) * 512)        # lane/sublane friendly
    if B > tb_cap:
        return tb_cap
    if B > 8192:
        return _round_up(-(-B // 2), 512)           # >=2 tiles: both TCs on v7x
    return min(tb_cap, _round_up(B, 128))           # single lane-dense tile


def _trainer_fwd_kernel(params_ref, w_ref, x_ref, y_ref,     # inputs
                        pred_ref, part_ref,                  # outputs
                        *, tb, batch):
    """One batch tile: lane-dense logits + fused masked partial sums."""
    pos_weight = params_ref[0]       # SMEM scalars (no recompile per value)
    logit_thresh = params_ref[1]
    bias = params_ref[2]

    x = x_ref[...]                   # (TB, D)  bf16 or f32 (may have garbage pad rows)
    w = w_ref[...]                   # (1, D)   same dtype as x

    # Linear head, batch kept on the LANE axis: (1,D) . (TB,D)^T -> (1,TB).
    # f32 accumulation on the MXU.
    z = jax.lax.dot_general(
        w, x, (((1,), (1,)), ((), ())),
        preferred_element_type=jnp.float32) + bias          # (1, TB) f32
    pred_ref[...] = z                                        # lane-dense store

    y = y_ref[...]                                           # (1, TB) f32 in {0,1}

    # Mask for the ragged last tile (x is unpadded in HBM -> garbage rows).
    lane = jax.lax.broadcasted_iota(jnp.int32, (1, tb), 1)
    valid = (pl.program_id(0) * tb + lane) < batch

    # BCEWithLogits with pos_weight (numerically stable softplus form):
    #   l = (1 - y) * z + (1 + (pw - 1) * y) * softplus(-z)
    softplus_neg = jnp.maximum(-z, 0.0) + jnp.log1p(jnp.exp(-jnp.abs(z)))
    per_ex = (1.0 - y) * z + (1.0 + (pos_weight - 1.0) * y) * softplus_neg

    # Decisions via logit compare (sigmoid(z) > t  <=>  z > logit(t)).
    predf = (z > logit_thresh).astype(jnp.float32)
    labelf = (y > 0.5).astype(jnp.float32)

    # jnp.where (not *mask): garbage rows may give Inf/NaN in per_ex.
    loss_row = jnp.where(valid, per_ex, 0.0)
    tp_row = jnp.where(valid, predf * labelf, 0.0)
    pp_row = jnp.where(valid, predf, 0.0)          # predicted positives
    lp_row = jnp.where(valid, labelf, 0.0)         # label positives

    # One fused cross-lane reduction over a (4, tb) stats block.
    stats = jnp.concatenate([loss_row, tp_row, pp_row, lp_row], axis=0)  # (4,tb)
    sums = jnp.sum(stats, axis=1, keepdims=True)                         # (4,1)
    sums8 = jnp.concatenate(
        [sums, jnp.zeros((4, 1), jnp.float32)], axis=0)                  # (8,1)
    # Dense (8,128)-aligned store (wrapper reads lane 0 of each sublane).
    part_ref[...] = jnp.broadcast_to(sums8, (8, 128))[None, :, :]


def multitask_trainer_forward(x, w, b, label, *, pos_weight, threshold,
                              compute_dtype=jnp.bfloat16, tb=None):
    """Returns (pred logits (B,1) f32, loss, accuracy, confusion_matrix (2,2) int32)."""
    B, D = x.shape
    dtype_bytes = jnp.dtype(compute_dtype).itemsize
    vmem_budget = _vmem_budget_bytes()
    if tb is None:
        tb = _choose_tb(B, D, dtype_bytes, vmem_budget)
    num_tiles = -(-B // tb)
    b_pad = num_tiles * tb

    logit_thresh = math.log(threshold / (1.0 - threshold))

    # x streams unpadded (no extra HBM pass). NOTE: if x is not already in
    # compute_dtype upstream, this cast is its own XLA pass; store x in bf16
    # upstream to avoid it entirely.
    x_c = x.astype(compute_dtype)
    w_row = jnp.asarray(w, jnp.float32).reshape(1, D).astype(compute_dtype)
    # Only the tiny label row / logits output are padded to b_pad.
    y_row = jnp.zeros((1, b_pad), jnp.float32).at[0, :B].set(
        jnp.asarray(label, jnp.float32).reshape(B))
    params = jnp.stack([
        jnp.float32(pos_weight),
        jnp.float32(logit_thresh),
        jnp.asarray(b, jnp.float32).reshape(()),
        jnp.float32(0.0),
    ])

    kernel = functools.partial(_trainer_fwd_kernel, tb=tb, batch=B)

    pred_row, partials = pl.pallas_call(
        kernel,
        out_shape=(
            jax.ShapeDtypeStruct((1, b_pad), jnp.float32),          # logits, lane-dense
            jax.ShapeDtypeStruct((num_tiles, 8, 128), jnp.float32),  # per-tile partials
        ),
        grid=(num_tiles,),
        in_specs=[
            pl.BlockSpec(memory_space=pltpu.MemorySpace.SMEM),      # params
            pl.BlockSpec((1, D), lambda i: (0, 0)),                 # w row
            pl.BlockSpec((tb, D), lambda i: (i, 0)),                # x tile (ragged last)
            pl.BlockSpec((1, tb), lambda i: (0, i)),                # labels tile
        ],
        out_specs=(
            pl.BlockSpec((1, tb), lambda i: (0, i)),                # logits tile
            pl.BlockSpec((1, 8, 128), lambda i: (i, 0, 0)),         # partial sums
        ),
        compiler_params=pltpu.CompilerParams(
            dimension_semantics=("parallel",),                      # v7x: 2 TCs
            vmem_limit_bytes=vmem_budget),
    )(params, w_row, x_c, y_row)

    # Tiny per-tile reduction on the XLA side.
    stats = jnp.sum(partials[:, :, 0], axis=0)          # (8,)
    loss_sum, tp, pp, lp = stats[0], stats[1], stats[2], stats[3]
    bf = jnp.float32(B)
    loss = loss_sum / bf
    # Exact identity for binary labels/predictions.
    acc = (bf - pp - lp + 2.0 * tp) / bf
    fp = pp - tp
    fn = lp - tp
    tn = bf - tp - fp - fn
    cm = jnp.stack([jnp.stack([tn, fp]), jnp.stack([fn, tp])]).astype(jnp.int32)

    pred = pred_row[0, :B].reshape(B, 1)
    return pred, loss, acc, cm


# ----------------------------- references -----------------------------------

def _reference_epilogue(z, label, *, pos_weight, threshold):
    """Pure-JAX loss/acc/cm from given logits (mirrors PyTorch)."""
    y = jnp.asarray(label, jnp.float32).reshape(-1, 1)
    z = jnp.asarray(z, jnp.float32).reshape(-1, 1)
    sp = jnp.maximum(-z, 0.0) + jnp.log1p(jnp.exp(-jnp.abs(z)))
    per = (1.0 - y) * z + (1.0 + (jnp.float32(pos_weight) - 1.0) * y) * sp
    loss = jnp.mean(per)
    pb = (jax.nn.sigmoid(z) > threshold).astype(jnp.float32)
    acc = jnp.mean((pb == y).astype(jnp.float32))
    tp = jnp.sum(y * pb)
    fp = jnp.sum((1.0 - y) * pb)
    fn = jnp.sum(y * (1.0 - pb))
    tn = jnp.sum((1.0 - y) * (1.0 - pb))
    cm = jnp.stack([jnp.stack([tn, fp]), jnp.stack([fn, tp])]).astype(jnp.int32)
    return loss, acc, cm


def _reference_full(x, w, b, label, *, pos_weight, threshold):
    z = x.astype(jnp.float32) @ jnp.asarray(w, jnp.float32) \
        + jnp.asarray(b, jnp.float32).reshape(1, 1)
    loss, acc, cm = _reference_epilogue(z, label,
                                        pos_weight=pos_weight,
                                        threshold=threshold)
    return z, loss, acc, cm


# --------------------------------- demo --------------------------------------

if __name__ == "__main__":
    key = jax.random.PRNGKey(0)
    kx1, kl1, kx2, kl2, kw = jax.random.split(key, 5)

    D = 32
    pos_weight = 3.0      # args.numberOfNonSpammer / args.numberOfSpammer
    threshold = 0.5       # args.threshold

    # kaiming_normal_(a=0.2, nonlinearity='leaky_relu')
    std = (2.0 / (1.0 + 0.2 ** 2)) ** 0.5 / (D ** 0.5)
    w = jax.random.normal(kw, (D, 1), dtype=jnp.float32) * std
    b = jnp.zeros((1, 1), dtype=jnp.float32)

    configs = [
        (6, None, kx1, kl1),     # single ragged tile (B < tile)
        (200, 128, kx2, kl2),    # forced tb=128 -> 2 tiles, ragged last tile
    ]

    for B, tb_force, kx, kl in configs:
        x = jax.random.normal(kx, (B, D), dtype=jnp.float32)
        label = jax.random.bernoulli(kl, 0.5, (B,)).astype(jnp.float32)

        pred, loss, acc, cm = multitask_trainer_forward(
            x, w, b, label, pos_weight=pos_weight, threshold=threshold,
            tb=tb_force)
        jax.block_until_ready((pred, loss, acc, cm))

        # Sanity check of the head vs. a full f32 reference (loose: bf16 MXU
        # stream + precision paths differ slightly from the XLA dot).
        rz, _, _, _ = _reference_full(x, w, b, label,
                                      pos_weight=pos_weight, threshold=threshold)
        assert pred.shape == (B, 1)
        assert jnp.allclose(pred, rz, atol=1e-1, rtol=5e-2), "pred mismatch"

        # Exact check of the loss/accuracy/confusion-matrix epilogue against
        # the kernel's own logits (precision-path independent).
        eloss, eacc, ecm = _reference_epilogue(pred, label,
                                               pos_weight=pos_weight,
                                               threshold=threshold)
        assert jnp.allclose(loss, eloss, atol=1e-4), "loss mismatch"
        assert jnp.allclose(acc, eacc, atol=1e-6), "accuracy mismatch"
        assert jnp.array_equal(cm, ecm), "confusion matrix mismatch"

    # f32 input-stream path (optional; bf16 is the default).
    B = 200
    x = jax.random.normal(kx2, (B, D), dtype=jnp.float32)
    label = jax.random.bernoulli(kl2, 0.5, (B,)).astype(jnp.float32)
    pred32, loss32, acc32, cm32 = multitask_trainer_forward(
        x, w, b, label, pos_weight=pos_weight, threshold=threshold,
        compute_dtype=jnp.float32, tb=128)
    jax.block_until_ready((pred32, loss32, acc32, cm32))
    rz, _, _, _ = _reference_full(x, w, b, label,
                                  pos_weight=pos_weight, threshold=threshold)
    assert jnp.allclose(pred32, rz, atol=1e-2, rtol=1e-2), "f32 pred mismatch"
    eloss, eacc, ecm = _reference_epilogue(pred32, label,
                                           pos_weight=pos_weight,
                                           threshold=threshold)
    assert jnp.allclose(loss32, eloss, atol=1e-4), "f32 loss mismatch"
    assert jnp.allclose(acc32, eacc, atol=1e-6), "f32 accuracy mismatch"
    assert jnp.array_equal(cm32, ecm), "f32 confusion matrix mismatch"

    print("KERNEL_OK")
</pallas_src>

<mosaic_0001>
module attributes {stable_mosaic.version = 11 : i64} {
  func.func @_trainer_fwd_kernel(%arg0: i32, %arg1: memref<4xf32, #tpu.memory_space<smem>>, %arg2: memref<1x32xbf16, #tpu.memory_space<vmem>>, %arg3: memref<128x32xbf16, #tpu.memory_space<vmem>>, %arg4: memref<1x128xf32, #tpu.memory_space<vmem>>, %arg5: memref<1x128xf32, #tpu.memory_space<vmem>>, %arg6: memref<1x8x128xf32, #tpu.memory_space<vmem>>) attributes {dimension_semantics = [#tpu.dimension_semantics<parallel>], iteration_bounds = array<i64: 1>, scalar_prefetch = 0 : i64, scratch_operands = 0 : i64, tpu.core_type = #tpu.core_type<tc>, window_params = [{transform_indices = @transform_0, window_bounds = array<i64: 4>}, {pipeline_mode = #tpu.pipeline_mode<synchronous>, transform_indices = @transform_1, window_bounds = array<i64: 1, 32>}, {transform_indices = @transform_2, window_bounds = array<i64: 128, 32>}, {transform_indices = @transform_3, window_bounds = array<i64: 1, 128>}, {transform_indices = @transform_4, window_bounds = array<i64: 1, 128>}, {transform_indices = @transform_5, window_bounds = array<i64: 1, 8, 128>}]} {
    %c0 = arith.constant 0 : index
    %0 = memref.load %arg1[%c0] : memref<4xf32, #tpu.memory_space<smem>>
    %c1 = arith.constant 1 : index
    %1 = memref.load %arg1[%c1] : memref<4xf32, #tpu.memory_space<smem>>
    %c2 = arith.constant 2 : index
    %2 = memref.load %arg1[%c2] : memref<4xf32, #tpu.memory_space<smem>>
    %c0_0 = arith.constant 0 : index
    %c0_1 = arith.constant 0 : index
    %3 = vector.load %arg3[%c0_0, %c0_1] : memref<128x32xbf16, #tpu.memory_space<vmem>>, vector<128x32xbf16>
    %c0_2 = arith.constant 0 : index
    %c0_3 = arith.constant 0 : index
    %4 = vector.load %arg2[%c0_2, %c0_3] : memref<1x32xbf16, #tpu.memory_space<vmem>>, vector<1x32xbf16>
    %cst = arith.constant dense<0.000000e+00> : vector<1x128xf32>
    %5 = tpu.matmul %4, %3, %cst {dimension_numbers = #tpu.dot_dimension_numbers<[1], [1], [0], [0], [0, 0, 1, 0], [], []>} : vector<1x32xbf16>, vector<128x32xbf16>, vector<1x128xf32> -> vector<1x128xf32>
    %6 = vector.broadcast %2 : f32 to vector<1x128xf32>
    %7 = arith.addf %5, %6 : vector<1x128xf32>
    %c0_4 = arith.constant 0 : index
    %c0_5 = arith.constant 0 : index
    %8 = vector.load %arg5[%c0_4, %c0_5] : memref<1x128xf32, #tpu.memory_space<vmem>>, vector<1x128xf32>
    tpu.vector_store %arg5[%c0_4, %c0_5], %7 {strides = array<i32>} : memref<1x128xf32, #tpu.memory_space<vmem>>, vector<1x128xf32>,
    %c0_6 = arith.constant 0 : index
    %c0_7 = arith.constant 0 : index
    %9 = vector.load %arg4[%c0_6, %c0_7] : memref<1x128xf32, #tpu.memory_space<vmem>>, vector<1x128xf32>
    %10 = tpu.iota {dimensions = array<i32: 1>} : vector<1x128xi32>
    %c128_i32 = arith.constant 128 : i32
    %11 = arith.muli %arg0, %c128_i32 : i32
    %12 = vector.broadcast %11 : i32 to vector<1x128xi32>
    %13 = arith.addi %12, %10 : vector<1x128xi32>
    %c6_i32 = arith.constant 6 : i32
    %14 = vector.broadcast %c6_i32 : i32 to vector<1x128xi32>
    %15 = arith.cmpi slt, %13, %14 : vector<1x128xi32>
    %cst_8 = arith.constant 0.000000e+00 : f32
    %16 = vector.broadcast %cst_8 : f32 to vector<1x128xf32>
    %17 = arith.subf %16, %7 : vector<1x128xf32>
    %cst_9 = arith.constant 0.000000e+00 : f32
    %18 = vector.broadcast %cst_9 : f32 to vector<1x128xf32>
    %19 = arith.maximumf %17, %18 : vector<1x128xf32>
    %20 = math.absf %7 : vector<1x128xf32>
    %cst_10 = arith.constant 0.000000e+00 : f32
    %21 = vector.broadcast %cst_10 : f32 to vector<1x128xf32>
    %22 = arith.subf %21, %20 : vector<1x128xf32>
    %23 = math.exp %22 : vector<1x128xf32>
    %24 = math.log1p %23 : vector<1x128xf32>
    %25 = arith.addf %19, %24 : vector<1x128xf32>
    %cst_11 = arith.constant 1.000000e+00 : f32
    %26 = vector.broadcast %cst_11 : f32 to vector<1x128xf32>
    %27 = arith.subf %26, %9 : vector<1x128xf32>
    %28 = arith.mulf %27, %7 : vector<1x128xf32>
    %cst_12 = arith.constant 1.000000e+00 : f32
    %29 = arith.subf %0, %cst_12 : f32
    %30 = vector.broadcast %29 : f32 to vector<1x128xf32>
    %31 = arith.mulf %30, %9 : vector<1x128xf32>
    %cst_13 = arith.constant 1.000000e+00 : f32
    %32 = vector.broadcast %cst_13 : f32 to vector<1x128xf32>
    %33 = arith.addf %32, %31 : vector<1x128xf32>
    %34 = arith.mulf %33, %25 : vector<1x128xf32>
    %35 = arith.addf %28, %34 : vector<1x128xf32>
    %36 = vector.broadcast %1 : f32 to vector<1x128xf32>
    %37 = arith.cmpf ogt, %7, %36 : vector<1x128xf32>
    %38 = arith.extui %37 : vector<1x128xi1> to vector<1x128xi32>
    %39 = arith.sitofp %38 : vector<1x128xi32> to vector<1x128xf32>
    %cst_14 = arith.constant 5.000000e-01 : f32
    %40 = vector.broadcast %cst_14 : f32 to vector<1x128xf32>
    %41 = arith.cmpf ogt, %9, %40 : vector<1x128xf32>
    %42 = arith.extui %41 : vector<1x128xi1> to vector<1x128xi32>
    %43 = arith.sitofp %42 : vector<1x128xi32> to vector<1x128xf32>
    %cst_15 = arith.constant 0.000000e+00 : f32
    %44 = vector.broadcast %cst_15 : f32 to vector<1x128xf32>
    %45 = arith.select %15, %35, %44 : vector<1x128xi1>, vector<1x128xf32>
    %46 = arith.mulf %39, %43 : vector<1x128xf32>
    %cst_16 = arith.constant 0.000000e+00 : f32
    %47 = vector.broadcast %cst_16 : f32 to vector<1x128xf32>
    %48 = arith.select %15, %46, %47 : vector<1x128xi1>, vector<1x128xf32>
    %cst_17 = arith.constant 0.000000e+00 : f32
    %49 = vector.broadcast %cst_17 : f32 to vector<1x128xf32>
    %50 = arith.select %15, %39, %49 : vector<1x128xi1>, vector<1x128xf32>
    %cst_18 = arith.constant 0.000000e+00 : f32
    %51 = vector.broadcast %cst_18 : f32 to vector<1x128xf32>
    %52 = arith.select %15, %43, %51 : vector<1x128xi1>, vector<1x128xf32>
    %53 = tpu.concatenate %45, %48, %50, %52 in 0 : vector<1x128xf32>, vector<1x128xf32>, vector<1x128xf32>, vector<1x128xf32> -> vector<4x128xf32>
    %cst_19 = arith.constant dense<0.000000e+00> : vector<4xf32>
    %54 = vector.multi_reduction <add>, %53, %cst_19 [1] : vector<4x128xf32> to vector<4xf32>
    %55 = vector.shape_cast %54 : vector<4xf32> to vector<4x1xf32>
    %cst_20 = arith.constant 0.000000e+00 : f32
    %56 = vector.broadcast %cst_20 : f32 to vector<4x1xf32>
    %57 = tpu.concatenate %55, %56 in 0 : vector<4x1xf32>, vector<4x1xf32> -> vector<8x1xf32>
    %58 = vector.shape_cast %57 : vector<8x1xf32> to vector<8x1xf32>
    %59 = vector.broadcast %58 : vector<8x1xf32> to vector<8x128xf32>
    %60 = vector.shape_cast %59 : vector<8x128xf32> to vector<1x8x128xf32>
    %c0_21 = arith.constant 0 : index
    %c0_22 = arith.constant 0 : index
    %c0_23 = arith.constant 0 : index
    %61 = vector.load %arg6[%c0_21, %c0_22, %c0_23] : memref<1x8x128xf32, #tpu.memory_space<vmem>>, vector<1x8x128xf32>
    tpu.vector_store %arg6[%c0_21, %c0_22, %c0_23], %60 {strides = array<i32>} : memref<1x8x128xf32, #tpu.memory_space<vmem>>, vector<1x8x128xf32>,
    return
  }
  func.func @transform_0(%arg0: i32) -> i32 {
    %c0_i32 = arith.constant 0 : i32
    %c0_i32_0 = arith.constant 0 : i32
    return %c0_i32 : i32
  }
  func.func @transform_1(%arg0: i32) -> (i32, i32) {
    %c0_i32 = arith.constant 0 : i32
    %c0_i32_0 = arith.constant 0 : i32
    %c0_i32_1 = arith.constant 0 : i32
    return %c0_i32, %c0_i32_0 : i32, i32
  }
  func.func @transform_2(%arg0: i32) -> (i32, i32) {
    %c0_i32 = arith.constant 0 : i32
    %c0_i32_0 = arith.constant 0 : i32
    return %arg0, %c0_i32 : i32, i32
  }
  func.func @transform_3(%arg0: i32) -> (i32, i32) {
    %c0_i32 = arith.constant 0 : i32
    %c0_i32_0 = arith.constant 0 : i32
    return %c0_i32, %arg0 : i32, i32
  }
  func.func @transform_4(%arg0: i32) -> (i32, i32) {
    %c0_i32 = arith.constant 0 : i32
    %c0_i32_0 = arith.constant 0 : i32
    return %c0_i32, %arg0 : i32, i32
  }
  func.func @transform_5(%arg0: i32) -> (i32, i32, i32) {
    %c0_i32 = arith.constant 0 : i32
    %c0_i32_0 = arith.constant 0 : i32
    %c0_i32_1 = arith.constant 0 : i32
    return %arg0, %c0_i32, %c0_i32_0 : i32, i32, i32
  }
}

</mosaic_0001>

<bundles_post_ra>
// kernel: tpu_custom_call.1
= control target key start
LH: loop header
LB: loop body
LE: loop exit
PB: predicated region body
PF: predicated region fallthrough
CT: control target
= control target key end

     0   :  { %11 = vsyncpa [#allocation5], 0  ;;  %s496_s0 = inlined_call_operand.hbm [shape: f32[4], index: 0, kind: input, shape index: {}]   ;;  %s497_s1 = inlined_call_operand.vmem [shape: bf16[1,32], index: 1, kind: input, shape index: {}]   ;;  %s498_s2 = inlined_call_operand.hbm [shape: bf16[6,32], index: 2, kind: input, shape index: {}]   ;;  %s499_s3 = inlined_call_operand.vmem [shape: f32[1,128], index: 3, kind: input, shape index: {}]   ;;  %s500_s4 = inlined_call_operand.hbm [shape: f32[1,128], index: 4, kind: output, shape index: {0}]   ;;  %s501_s5 = inlined_call_operand.hbm [shape: f32[1,8,128], index: 5, kind: output, shape index: {1}]  }
   0x1   :  { %12 = vsyncpa [#allocation3], 0 }
   0x2   :  { %13 = vsyncpa [#allocation4], 0 }
   0x3   :  { %14 = vsyncpa [#allocation9], 0  ;;  %s417_s18 = smov [#allocation2]  }
   0x4   :  { %22 = dma.hbm_to_smem %s496_s0, 16, %s417_s18, [#allocation5]  }
   0x5   :  { %29 = vsyncadd [#allocation3], 960  ;;  %s418_s21 = smov [#allocation6]  }
   0x6   :  { %s30_s22 = sshll.u32 %s418_s21, 4  ;;  %s31_s22 = int_to_ptr.vmem [resolvable:$true] %s30_s22 }
   0x7   :  { %s357_s23 = scalar_lea.vmem %s31_s22, 64  ;;  %s361_s24 = scalar_lea.vmem %s31_s22, 1024 }
   0x8   :  { %p358_p0 = scmp.ne.s32.totalorder %s31_s22, %s357_s23  ;;  %p362_p1 = scmp.lt.s32.totalorder %s31_s22, %s31_s22 }
   0x9   :  { %p363_p2 = scmp.lt.s32.totalorder %s361_s24, %s357_s23 }
   0xb   :  { %p364_p3 = por %p363_p2, %p362_p1 }
   0xd   :  { %p365_p4 = pnand %p364_p3, %p358_p0 }
   0xf   :  { %368 = shalt.err (!%p365_p4)
}
  0x10   :  { %s419_s25 = smov 64   ;;  %s420_s26 = smov 4  }
  0x11   :  { %36 = dma.hbm_to_vmem [thread:$0]  %s498_s2, 64, %s31_s22, [#allocation3], %s419_s25, %s419_s25, %s420_s26  }
  0x12   :  { %409 = dma.done.wait [#allocation5], 16  }
  0x13   :  { %410 = vsyncadd [#allocation5], 4294967280 }
  0x14   :  { %411 = dma.done.wait [#allocation3], 1024  }
  0x15   :  { %412 = vsyncadd [#allocation3], 4294966272 }
  0x16   :  { %45 = sfence }
  0x17   :  { %v329_v0 = vld [vmem:[#allocation6 + $0x38] sm:$0xff]   ;;  %v421_v1 = vmov 0.0   ;;  %vm108_vm0 = vcmask 261120   ;;  %v330_v3 = vld [vmem:[#allocation6 + $0x30] sm:$0xff]   ;;  %vm422_vm1 = vmmov 0   ;;  %v331_v5 = vld [vmem:[#allocation6 + $0x28] sm:$0xff]   ;;  %v178_v33 = vlaneseq }
  0x18   :  { %299 = vmatprep.subr.bf16.mxu0 %v421_v1  ;;  %v134_v2 = vsel %vm108_vm0, %v329_v0, 0  ;;  %v131_v4 = vsel %vm108_vm0, %v330_v3, 0  ;;  %315 = vmatprep.mubr.msk.bf16.mxu0 %vm422_vm1, %v421_v1  ;;  %v128_v6 = vsel %vm108_vm0, %v331_v5, 0  ;;  %v332_v7 = vld [vmem:[#allocation6 + $0x20] sm:$0xff]   ;;  %v333_v9 = vld [vmem:[#allocation6 + $0x18] sm:$0xff]   ;;  %v334_v11 = vld [vmem:[#allocation6 + $0x10] sm:$0xff]  }
  0x19   :  { %300 = vmatpush3.bf16.xpose.msra.mxu0 %v134_v2  ;;  %v125_v8 = vsel %vm108_vm0, %v332_v7, 0  ;;  %v122_v10 = vsel %vm108_vm0, %v333_v9, 0  ;;  %v119_v12 = vsel %vm108_vm0, %v334_v11, 0  ;;  %v335_v13 = vld [vmem:[#allocation6 + $0x8] sm:$0xff]   ;;  %v336_v15 = vld [vmem:[#allocation6] sm:$0xff]   ;;  %s277_s29 = sld [smem:[#allocation2 + $0x2]] }
  0x1a   :  { %301 = vmatprep.subr.bf16.mxu0 %v421_v1  ;;  %v116_v14 = vsel %vm108_vm0, %v335_v13, 0  ;;  %v113_v16 = vsel %vm108_vm0, %v336_v15, 0  ;;  %v66_v17 = vld [vmem:[%s497_s1] sm:$0x1]  ;;  %s47_s30 = sld [smem:[#allocation2]]  ;;  %v179_v41 = vand.u32 127, %v178_v33 }
  0x1b   :  { %s276_s6 = sld [smem:[#allocation2 + $0x1]]  ;;  %v177_v31 = vld [vmem:[%s499_s3] sm:$0x1]  ;;  %vm229_vm6 = vcmask 1040384   ;;  %vm231_vm7 = vcmask 1041408   ;;  %vm233_vm8 = vcmask 1042432  }
  0x1c   :  { %vm212_vm3 = vcmp.gt.f32.partialorder %v177_v31, 0.5  ;;  %v200_v44 = vsub.f32 1.0, %v177_v31  ;;  %vm183_vm5 = vcmp.lt.s32.totalorder %v179_v41, 6  ;;  %vm235_vm9 = vcmask 1043456   ;;  %s424_s3 = smov [#allocation7]  }
  0x1d   :  { %v289_v39 = vsel %vm212_vm3, 1.0, %v421_v1  ;;  %v423_v0 = vmov 0   ;;  %s252_s9 = sshll.u32 %s424_s3, 4  ;;  %s253_s9 = int_to_ptr.vmem [resolvable:$true] %s252_s9 }
  0x1e   :  { %v219_v53 = vsel %vm183_vm5, %v289_v39, 0.0  ;;  %328 = vset.pattern.permute.xlu0 %v423_v0  ;;  %s369_s10 = scalar_lea.vmem %s253_s9, 16  ;;  %s373_s11 = scalar_lea.vmem %s253_s9, 32 }
  0x1f   :  { %v67_v18 = vstv %s277_s29  ;;  %v227_v57 = vrot.slane %v219_v53, 5  ;;  %p370_p5 = scmp.ne.s32.totalorder %s253_s9, %s369_s10  ;;  %p374_p6 = scmp.lt.s32.totalorder %s253_s9, %s253_s9 }
  0x20   :  { %s287_s1 = sadd.f32 -1.0, %s47_s30  ;;  %p375_p7 = scmp.lt.s32.totalorder %s373_s11, %s369_s10 }
  0x21   :  { %302 = vmatpush3.bf16.xpose.msra.mxu0 %v131_v4  ;;  %v208_v30 = vstv %s276_s6 }
  0x22   :  { %303 = vmatprep.subr.bf16.mxu0 %v421_v1  ;;  %v203_v32 = vstv %s287_s1  ;;  %p376_p8 = por %p375_p7, %p374_p6 }
  0x23   :  { %v204_v37 = vmul.f32 %v203_v32, %v177_v31 }
  0x24   :  { %p377_p9 = pnand %p376_p8, %p370_p5 }
  0x25   :  { %v205_v46 = vadd.f32 1.0, %v204_v37 }
  0x29   :  { %304 = vmatpush3.bf16.xpose.msra.mxu0 %v128_v6 }
  0x2a   :  { %305 = vmatprep.subr.bf16.mxu0 %v421_v1 }
  0x31   :  { %306 = vmatpush3.bf16.xpose.msra.mxu0 %v125_v8 }
  0x32   :  { %307 = vmatprep.subr.bf16.mxu0 %v421_v1 }
  0x39   :  { %308 = vmatpush3.bf16.xpose.msra.mxu0 %v122_v10 }
  0x3a   :  { %309 = vmatprep.subr.bf16.mxu0 %v421_v1 }
  0x41   :  { %310 = vmatpush3.bf16.xpose.msra.mxu0 %v119_v12 }
  0x42   :  { %311 = vmatprep.subr.bf16.mxu0 %v421_v1 }
  0x49   :  { %312 = vmatpush3.bf16.xpose.msra.mxu0 %v116_v14 }
  0x4a   :  { %313 = vmatprep.subr.bf16.mxu0 %v421_v1 }
  0x51   :  { %314 = vmatpush3.bf16.xpose.msra.mxu0 %v113_v16 }
  0x58   :  { %316 = vmatmul.mubr.msk.bf16.vlgmr.msra.gmra.mxu0 %vm108_vm0, %v66_v17 }
 0x118   :  { %v170_v19 = vpop.f32.mrf.mxu0 }
 0x119   :  { %v171_v20 = vadd.f32 %v170_v19, %v67_v18 }
 0x11a   :  { %v317_v21 = vpop.f32.mrf.mxu0 }
 0x11b   :  { %v186_v22 = vand.u32 2147483647, %v171_v20  ;;  %176 = vst [vmem:[#allocation7] sm:$0x1] %v171_v20  ;;  %vm209_vm2 = vcmp.gt.f32.partialorder %v171_v20, %v208_v30  ;;  %v184_v35 = vsub.f32 0.0, %v171_v20  ;;  %v201_v50 = vmul.f32 %v200_v44, %v171_v20 }
 0x11c   :  { %v173_v23 = vpop.f32.mrf.mxu0  ;;  %v288_v38 = vsel %vm209_vm2, 1.0, %v421_v1 }
 0x11d   :  { %v187_v24 = vsub.f32 0.0, %v186_v22  ;;  %v185_v45 = vmax.f32 %v184_v35, 0.0  ;;  %v216_v47 = vmul.f32 %v289_v39, %v288_v38  ;;  %v218_v54 = vsel %vm183_vm5, %v288_v38, 0.0 }
 0x11e   :  { %v318_v25 = vpop.f32.mrf.mxu0  ;;  %v224_v59 = vrot.slane %v218_v54, 6 }
 0x11f   :  { %v188_v26 = vmul.f32 1.442695, %v187_v24  ;;  %v217_v52 = vsel %vm183_vm5, %v216_v47, 0.0 }
 0x120   :  { %v221_v56 = vrot.slane %v217_v52, 7 }
 0x121   :  { %337 = vpow2.f32 %v188_v26 }
 0x12e   :  { %v338_v27 = vpop.eup %337 }
 0x12f   :  { %v190_v28 = vadd.f32 1.0, %v338_v27  ;;  %v193_v29 = vmul.f32 -0.5, %v338_v27  ;;  %v196_v36 = vand.u32 2147483647, %v338_v27 }
 0x131   :  { %339 = vlog2.f32 %v190_v28  ;;  %v194_v34 = vadd.f32 1.0, %v193_v29  ;;  %vm197_vm4 = vcmp.lt.f32.partialorder %v196_v36, 0.0004427343 }
 0x133   :  { %v195_v43 = vmul.f32 %v338_v27, %v194_v34 }
 0x13e   :  { %v340_v40 = vpop.eup %339 }
 0x13f   :  { %v192_v42 = vmul.f32 0.6931472, %v340_v40 }
 0x141   :  { %v198_v48 = vsel %vm197_vm4, %v195_v43, %v192_v42 }
 0x142   :  { %v199_v49 = vadd.f32 %v198_v48, %v185_v45 }
 0x144   :  { %v206_v51 = vmul.f32 %v205_v46, %v199_v49 }
 0x146   :  { %v207_v55 = vadd.f32 %v206_v51, %v201_v50 }
 0x148   :  { %v215_v58 = vsel %vm183_vm5, %v207_v55, 0.0 }
 0x149   :  { %v230_v60 = vsel %vm229_vm6, %v215_v58, %v221_v56 }
 0x14a   :  { %v232_v61 = vsel %vm231_vm7, %v230_v60, %v224_v59 }
 0x14b   :  { %v234_v62 = vsel %vm233_vm8, %v232_v61, %v227_v57 }
 0x14c   :  { %v236_v63 = vsel %vm235_vm9, %v234_v62, 0.0 }
 0x14d   :  { %237 = vadd.xlane.f32.xlu0 %v236_v63 }
 0x14e   :  { %380 = shalt.err (!%p377_p9)
}
 0x14f   :  { %255 = dma.vmem_to_hbm [thread:$0]  %s253_s9, 16, %s500_s4, [#allocation4]  }
 0x150   :  { %s425_s14 = smov [#allocation8]  }
 0x151   :  { %s262_s15 = sshll.u32 %s425_s14, 4  ;;  %s263_s15 = int_to_ptr.vmem [resolvable:$true] %s262_s15 }
 0x152   :  { %s389_s16 = scalar_lea.vmem %s263_s15, 128  ;;  %p394_p11 = scmp.lt.s32.totalorder %s263_s15, %s263_s15 }
 0x153   :  { %p390_p10 = scmp.ne.s32.totalorder %s263_s15, %s389_s16  ;;  %p395_p12 = scmp.lt.s32.totalorder %s389_s16, %s389_s16 }
 0x155   :  { %p396_p13 = por %p395_p12, %p394_p11 }
 0x157   :  { %p397_p0 = pnand %p396_p13, %p390_p10 }
 0x1d6   :  { %v238_v1 = vpop.xlane.xlu0 %237 }
 0x1d7   :  { %v239_v2 = vsel %vm235_vm9, %v238_v1, 0.0 }
 0x1d8   :  { %242 = vperm.xlu0 %328, %v239_v2  }
 0x253   :  { %v243_v3 = vpop.permute.xlu0 %242 }
 0x254   :  { %245 = vst [vmem:[#allocation8] sm:$0xff] %v243_v3 }
 0x255   :  { %400 = shalt.err (!%p397_p0)
}
 0x256   :  { %265 = dma.vmem_to_hbm [thread:$0]  %s263_s15, 128, %s501_s5, [#allocation9]  }
 0x257   :  { %413 = dma.done.wait [#allocation4], 16  }
 0x258   :  { %414 = vsyncadd [#allocation4], 4294967280 }
 0x259   :  { %415 = dma.done.wait [#allocation9], 128  }
 0x25a   :  { %416 = vsyncadd [#allocation9], 4294967168 }
 0x25b   :  { %272 = vsyncpa [#allocation3], 1 }
 0x25c   :  { %273 = vsyncpa [#allocation4], 1 }
 0x25d   :  { %274 = vsyncpa [#allocation9], 1 }
 0x25e   :  { %275 = vsyncpa [#allocation5], 1 }

</bundles_post_ra>
